<compile_context>
chip_gen: v7x
topology: tpu7x:2x2x1
jax: 0.10.0
libtpu: 0.0.40
codegen_flags: <defaults>
</compile_context>

<pallas_src>
import functools

import jax
import jax.numpy as jnp
from jax.experimental import pallas as pl
from jax.experimental.pallas import tpu as pltpu

_NEG_BIG = -1e30  # finite additive mask value (avoids NaN/inf propagation)


def _round_up(v, m):
    return (v + m - 1) // m * m


def _textcnn_kernel(tb, s_pad, d, nkf, k_max,
                    x_ref, w_ref, mask_ref, b_ref, fcw_ref, fcb_ref, out_ref):
    """One grid step over `tb` whole (zero-padded) sequences.

    x_ref   : (tb*s_pad, d)   bf16  flattened, per-sequence zero-padded tokens
    w_ref   : (k_max*d, nkf)  bf16  fused conv banks; rows [j*d, (j+1)*d) = tap j
    mask_ref: (s_pad, nkf)    f32   additive {0, -BIG} window-validity mask
    b_ref   : (1, nkf)        f32   conv bias (added after the max-pool)
    fcw_ref : (nkf, out_pad)  bf16  FC weight, lane-padded to a multiple of 128
    fcb_ref : (1, out_pad)    f32
    out_ref : (tb, out_pad)   f32
    """
    rows = tb * s_pad
    x = x_ref[...]                                             # (rows, d) bf16

    # conv[r, :] = sum_j x[r + j, :] @ W_j
    # Each tap is a full-size aligned matmul; the +j shift is a sublane roll of
    # the f32 result.  Wrap-around rows correspond to positions >= S, which the
    # additive mask kills before the max-pool, so the roll is exact.
    conv = jnp.dot(x, w_ref[0:d, :], preferred_element_type=jnp.float32)
    for j in range(1, k_max):
        yj = jnp.dot(x, w_ref[j * d:(j + 1) * d, :],
                     preferred_element_type=jnp.float32)       # (rows, nkf)
        conv = conv + pltpu.roll(yj, shift=rows - j, axis=0)   # y[r] = yj[r+j]

    conv = conv.reshape(tb, s_pad, nkf)       # metadata-only (s_pad % 16 == 0)
    conv = conv + mask_ref[...]               # invalid / padding positions -> -BIG

    # Max-pool over time; bias commutes with the max (constant along time).
    pooled = jnp.max(conv, axis=1) + b_ref[...]                # (tb, nkf) f32

    # Dropout is eval-mode identity.
    # TODO(synk): training-mode dropout would need pltpu.prng_* masking here.
    out = jnp.dot(pooled.astype(fcw_ref.dtype), fcw_ref[...],
                  preferred_element_type=jnp.float32) + fcb_ref[...]
    out_ref[...] = out.astype(out_ref.dtype)


def _pick_batch_tile(batch, s_pad, d, nkf, budget_bytes):
    """Largest divisor of `batch` (== batch, or a multiple of 8) whose per-step
    working set (double-buffered bf16 x tile + f32 conv intermediates + output)
    fits the VMEM budget."""
    cands = [t for t in range(batch, 0, -1)
             if batch % t == 0 and (t == batch or t % 8 == 0)]
    for t in cands:
        live = (2 * t * s_pad * d * 2          # double-buffered bf16 x tile
                + 3 * t * s_pad * nkf * 4      # f32 conv intermediates
                + 2 * t * 128 * 4)             # double-buffered output tile
        if live <= budget_bytes:
            return t
    return cands[-1]


def textcnn_forward(x, conv_ws, conv_bs, fc_w, fc_b, kernel_sizes,
                    batch_tile=None, vmem_budget_bytes=16 << 20):
    """x: (B, S, D); conv_ws[i]: (F, 1, k_i, D) torch layout; conv_bs[i]: (F,);
    fc_w: (out, len(ks)*F) torch layout; fc_b: (out,)."""
    B, S, D = x.shape
    F_num = conv_ws[0].shape[0]
    out_size = fc_w.shape[0]
    ks = tuple(int(k) for k in kernel_sizes)
    k_max = max(ks)
    nkf = len(ks) * F_num
    assert all(k <= S for k in ks), "kernel size larger than sequence length"

    # Per-sequence padding: multiple of 16 (bf16 sublane packing -> metadata
    # reshapes) and >= S + k_max - 1 so every position whose window leaves its
    # own sequence (incl. the rolled wrap-around rows) is a masked position.
    s_pad = _round_up(max(S + k_max - 1, 16), 16)
    out_pad = _round_up(max(out_size, 128), 128)

    # ---- parameter / input layout plumbing (wrapper side, XLA) ----
    x2 = jnp.pad(x, ((0, 0), (0, s_pad - S), (0, 0)))
    x2 = x2.reshape(B * s_pad, D).astype(jnp.bfloat16)

    blocks, biases = [], []
    for w, b, k in zip(conv_ws, conv_bs, ks):
        w2 = jnp.transpose(w[:, 0, :, :], (1, 2, 0)).reshape(k * D, F_num)
        if k < k_max:
            w2 = jnp.concatenate(
                [w2, jnp.zeros(((k_max - k) * D, F_num), w2.dtype)], axis=0)
        blocks.append(w2)
        biases.append(b.reshape(1, F_num))
    w_big = jnp.concatenate(blocks, axis=1).astype(jnp.bfloat16)   # (k_max*D, nkf)
    b_big = jnp.concatenate(biases, axis=1).astype(jnp.float32)    # (1, nkf)

    # Additive {0, -BIG} validity mask per (time position, output lane).
    pos = jnp.arange(s_pad, dtype=jnp.int32)[:, None]              # (s_pad, 1)
    valid_len = jnp.repeat(
        jnp.asarray([S - k + 1 for k in ks], jnp.int32), F_num)    # (nkf,)
    mask = jnp.where(pos < valid_len[None, :], 0.0, _NEG_BIG).astype(jnp.float32)

    fc_wt = jnp.zeros((nkf, out_pad), jnp.float32).at[:, :out_size].set(fc_w.T)
    fc_wt = fc_wt.astype(jnp.bfloat16)                             # (nkf, out_pad)
    fc_b2 = jnp.zeros((1, out_pad), jnp.float32).at[:, :out_size].set(
        fc_b.reshape(1, -1))

    if batch_tile is None:
        batch_tile = _pick_batch_tile(B, s_pad, D, nkf, vmem_budget_bytes)
    tb = int(batch_tile)
    assert B % tb == 0 and (tb == B or tb % 8 == 0), (B, tb)

    kern = functools.partial(_textcnn_kernel, tb, s_pad, D, nkf, k_max)

    flops = 2 * B * s_pad * D * nkf * k_max + 2 * B * nkf * out_pad
    bytes_acc = (x2.size * 2 + w_big.size * 2 + fc_wt.size * 2
                 + (mask.size + b_big.size + fc_b2.size + B * out_pad) * 4)

    out = pl.pallas_call(
        kern,
        out_shape=jax.ShapeDtypeStruct((B, out_pad), jnp.float32),
        grid=(B // tb,),
        in_specs=[
            pl.BlockSpec((tb * s_pad, D), lambda i: (i, 0)),       # streamed x
            pl.BlockSpec((k_max * D, nkf), lambda i: (0, 0)),      # resident
            pl.BlockSpec((s_pad, nkf), lambda i: (0, 0)),          # resident
            pl.BlockSpec((1, nkf), lambda i: (0, 0)),              # resident
            pl.BlockSpec((nkf, out_pad), lambda i: (0, 0)),        # resident
            pl.BlockSpec((1, out_pad), lambda i: (0, 0)),          # resident
        ],
        out_specs=pl.BlockSpec((tb, out_pad), lambda i: (i, 0)),
        compiler_params=pltpu.CompilerParams(
            dimension_semantics=("parallel",)),
        cost_estimate=pl.CostEstimate(flops=flops, transcendentals=0,
                                      bytes_accessed=bytes_acc),
    )(x2, w_big, mask, b_big, fc_wt, fc_b2)

    return out[:, :out_size].astype(x.dtype)


def ref_forward(x, conv_ws, conv_bs, fc_w, fc_b, kernel_sizes):
    """Pure-JAX f32 reference matching the PyTorch semantics (eval mode)."""
    B, S, D = x.shape
    pooled = []
    for w, b, k in zip(conv_ws, conv_bs, kernel_sizes):
        L = S - k + 1
        w2 = w.reshape(w.shape[0], -1)                      # (F, k*D)
        feats = []
        for i in range(L):
            win = x[:, i:i + k, :].reshape(B, -1)           # (B, k*D)
            feats.append(win @ w2.T + b)                    # (B, F)
        conv = jnp.stack(feats, axis=1)                     # (B, L, F)
        pooled.append(jnp.max(conv, axis=1))                # (B, F)
    feat = jnp.concatenate(pooled, axis=1)                  # (B, n_k*F)
    return feat @ fc_w.T + fc_b


if __name__ == "__main__":
    key = jax.random.PRNGKey(0)
    B, S, D = 16, 16, 32           # batch, seq_len, input_size (embed dim)
    F_NUM = 16                     # filter_num
    K_SIZES = [3, 4]               # kernel_sizes
    OUT = 8                        # output_size
    # dropout rate irrelevant in eval mode (identity)

    keys = jax.random.split(key, 2 + 2 * len(K_SIZES) + 2)
    x = jax.random.normal(keys[0], (B, S, D), jnp.float32)
    conv_ws, conv_bs = [], []
    for i, k in enumerate(K_SIZES):
        conv_ws.append(0.1 * jax.random.normal(keys[1 + 2 * i],
                                               (F_NUM, 1, k, D), jnp.float32))
        conv_bs.append(0.1 * jax.random.normal(keys[2 + 2 * i],
                                               (F_NUM,), jnp.float32))
    fc_w = 0.1 * jax.random.normal(keys[-2], (OUT, len(K_SIZES) * F_NUM), jnp.float32)
    fc_b = 0.1 * jax.random.normal(keys[-1], (OUT,), jnp.float32)

    # batch_tile=8 -> 2-step parallel grid, exercising the streaming BlockSpecs.
    out = textcnn_forward(x, conv_ws, conv_bs, fc_w, fc_b, K_SIZES, batch_tile=8)
    out = jax.block_until_ready(out)

    ref = ref_forward(x, conv_ws, conv_bs, fc_w, fc_b, K_SIZES)
    assert out.shape == (B, OUT), out.shape
    # bf16 MXU operands (f32 accumulate) -> loose tolerance vs. the f32 reference.
    assert jnp.allclose(out, ref, rtol=5e-2, atol=5e-2), (out, ref)
    print("KERNEL_OK")
</pallas_src>

<mosaic_0001>
module attributes {stable_mosaic.version = 11 : i64} {
  func.func @_textcnn_kernel(%arg0: i32, %arg1: memref<256x32xbf16, #tpu.memory_space<vmem>>, %arg2: memref<128x32xbf16, #tpu.memory_space<vmem>>, %arg3: memref<32x32xf32, #tpu.memory_space<vmem>>, %arg4: memref<1x32xf32, #tpu.memory_space<vmem>>, %arg5: memref<32x128xbf16, #tpu.memory_space<vmem>>, %arg6: memref<1x128xf32, #tpu.memory_space<vmem>>, %arg7: memref<8x128xf32, #tpu.memory_space<vmem>>) attributes {dimension_semantics = [#tpu.dimension_semantics<parallel>], iteration_bounds = array<i64: 2>, scalar_prefetch = 0 : i64, scratch_operands = 0 : i64, tpu.core_type = #tpu.core_type<tc>, window_params = [{transform_indices = @transform_0, window_bounds = array<i64: 256, 32>}, {pipeline_mode = #tpu.pipeline_mode<synchronous>, transform_indices = @transform_1, window_bounds = array<i64: 128, 32>}, {pipeline_mode = #tpu.pipeline_mode<synchronous>, transform_indices = @transform_2, window_bounds = array<i64: 32, 32>}, {pipeline_mode = #tpu.pipeline_mode<synchronous>, transform_indices = @transform_3, window_bounds = array<i64: 1, 32>}, {pipeline_mode = #tpu.pipeline_mode<synchronous>, transform_indices = @transform_4, window_bounds = array<i64: 32, 128>}, {pipeline_mode = #tpu.pipeline_mode<synchronous>, transform_indices = @transform_5, window_bounds = array<i64: 1, 128>}, {transform_indices = @transform_6, window_bounds = array<i64: 8, 128>}]} {
    %c0 = arith.constant 0 : index
    %c0_0 = arith.constant 0 : index
    %0 = vector.load %arg1[%c0, %c0_0] : memref<256x32xbf16, #tpu.memory_space<vmem>>, vector<256x32xbf16>
    %c0_1 = arith.constant 0 : index
    %c0_2 = arith.constant 0 : index
    %1 = vector.load %arg2[%c0_1, %c0_2] : memref<128x32xbf16, #tpu.memory_space<vmem>>, vector<32x32xbf16>
    %cst = arith.constant dense<0.000000e+00> : vector<256x32xf32>
    %2 = tpu.matmul %0, %1, %cst {dimension_numbers = #tpu.dot_dimension_numbers<[1], [0], [0], [1], [0, 0, 1, 1], [], []>} : vector<256x32xbf16>, vector<32x32xbf16>, vector<256x32xf32> -> vector<256x32xf32>
    %c32 = arith.constant 32 : index
    %c0_3 = arith.constant 0 : index
    %3 = vector.load %arg2[%c32, %c0_3] : memref<128x32xbf16, #tpu.memory_space<vmem>>, vector<32x32xbf16>
    %cst_4 = arith.constant dense<0.000000e+00> : vector<256x32xf32>
    %4 = tpu.matmul %0, %3, %cst_4 {dimension_numbers = #tpu.dot_dimension_numbers<[1], [0], [0], [1], [0, 0, 1, 1], [], []>} : vector<256x32xbf16>, vector<32x32xbf16>, vector<256x32xf32> -> vector<256x32xf32>
    %c255_i32 = arith.constant 255 : i32
    %5 = tpu.dynamic_rotate %4 by %c255_i32 dim 0 : vector<256x32xf32>, i32 -> vector<256x32xf32>
    %6 = arith.addf %2, %5 : vector<256x32xf32>
    %c64 = arith.constant 64 : index
    %c0_5 = arith.constant 0 : index
    %7 = vector.load %arg2[%c64, %c0_5] : memref<128x32xbf16, #tpu.memory_space<vmem>>, vector<32x32xbf16>
    %cst_6 = arith.constant dense<0.000000e+00> : vector<256x32xf32>
    %8 = tpu.matmul %0, %7, %cst_6 {dimension_numbers = #tpu.dot_dimension_numbers<[1], [0], [0], [1], [0, 0, 1, 1], [], []>} : vector<256x32xbf16>, vector<32x32xbf16>, vector<256x32xf32> -> vector<256x32xf32>
    %c254_i32 = arith.constant 254 : i32
    %9 = tpu.dynamic_rotate %8 by %c254_i32 dim 0 : vector<256x32xf32>, i32 -> vector<256x32xf32>
    %10 = arith.addf %6, %9 : vector<256x32xf32>
    %c96 = arith.constant 96 : index
    %c0_7 = arith.constant 0 : index
    %11 = vector.load %arg2[%c96, %c0_7] : memref<128x32xbf16, #tpu.memory_space<vmem>>, vector<32x32xbf16>
    %cst_8 = arith.constant dense<0.000000e+00> : vector<256x32xf32>
    %12 = tpu.matmul %0, %11, %cst_8 {dimension_numbers = #tpu.dot_dimension_numbers<[1], [0], [0], [1], [0, 0, 1, 1], [], []>} : vector<256x32xbf16>, vector<32x32xbf16>, vector<256x32xf32> -> vector<256x32xf32>
    %c253_i32 = arith.constant 253 : i32
    %13 = tpu.dynamic_rotate %12 by %c253_i32 dim 0 : vector<256x32xf32>, i32 -> vector<256x32xf32>
    %14 = arith.addf %10, %13 : vector<256x32xf32>
    %15 = vector.shape_cast %14 : vector<256x32xf32> to vector<8x32x32xf32>
    %c0_9 = arith.constant 0 : index
    %c0_10 = arith.constant 0 : index
    %16 = vector.load %arg3[%c0_9, %c0_10] : memref<32x32xf32, #tpu.memory_space<vmem>>, vector<32x32xf32>
    %17 = vector.shape_cast %16 : vector<32x32xf32> to vector<1x32x32xf32>
    %18 = vector.broadcast %17 : vector<1x32x32xf32> to vector<8x32x32xf32>
    %19 = arith.addf %15, %18 : vector<8x32x32xf32>
    %cst_11 = arith.constant dense<0xFF800000> : vector<8x32xf32>
    %20 = vector.multi_reduction <maximumf>, %19, %cst_11 [1] : vector<8x32x32xf32> to vector<8x32xf32>
    %c0_12 = arith.constant 0 : index
    %c0_13 = arith.constant 0 : index
    %21 = vector.load %arg4[%c0_12, %c0_13] : memref<1x32xf32, #tpu.memory_space<vmem>>, vector<1x32xf32>
    %22 = vector.broadcast %21 : vector<1x32xf32> to vector<8x32xf32>
    %23 = arith.addf %20, %22 : vector<8x32xf32>
    %24 = arith.truncf %23 : vector<8x32xf32> to vector<8x32xbf16>
    %c0_14 = arith.constant 0 : index
    %c0_15 = arith.constant 0 : index
    %25 = vector.load %arg5[%c0_14, %c0_15] : memref<32x128xbf16, #tpu.memory_space<vmem>>, vector<32x128xbf16>
    %cst_16 = arith.constant dense<0.000000e+00> : vector<8x128xf32>
    %26 = tpu.matmul %24, %25, %cst_16 {dimension_numbers = #tpu.dot_dimension_numbers<[1], [0], [0], [1], [0, 0, 1, 1], [], []>} : vector<8x32xbf16>, vector<32x128xbf16>, vector<8x128xf32> -> vector<8x128xf32>
    %c0_17 = arith.constant 0 : index
    %c0_18 = arith.constant 0 : index
    %27 = vector.load %arg6[%c0_17, %c0_18] : memref<1x128xf32, #tpu.memory_space<vmem>>, vector<1x128xf32>
    %28 = vector.broadcast %27 : vector<1x128xf32> to vector<8x128xf32>
    %29 = arith.addf %26, %28 : vector<8x128xf32>
    %c0_19 = arith.constant 0 : index
    %c0_20 = arith.constant 0 : index
    %30 = vector.load %arg7[%c0_19, %c0_20] : memref<8x128xf32, #tpu.memory_space<vmem>>, vector<8x128xf32>
    tpu.vector_store %arg7[%c0_19, %c0_20], %29 {strides = array<i32>} : memref<8x128xf32, #tpu.memory_space<vmem>>, vector<8x128xf32>,
    return
  }
  func.func @transform_0(%arg0: i32) -> (i32, i32) {
    %c0_i32 = arith.constant 0 : i32
    %c0_i32_0 = arith.constant 0 : i32
    return %arg0, %c0_i32 : i32, i32
  }
  func.func @transform_1(%arg0: i32) -> (i32, i32) {
    %c0_i32 = arith.constant 0 : i32
    %c0_i32_0 = arith.constant 0 : i32
    %c0_i32_1 = arith.constant 0 : i32
    return %c0_i32, %c0_i32_0 : i32, i32
  }
  func.func @transform_2(%arg0: i32) -> (i32, i32) {
    %c0_i32 = arith.constant 0 : i32
    %c0_i32_0 = arith.constant 0 : i32
    %c0_i32_1 = arith.constant 0 : i32
    return %c0_i32, %c0_i32_0 : i32, i32
  }
  func.func @transform_3(%arg0: i32) -> (i32, i32) {
    %c0_i32 = arith.constant 0 : i32
    %c0_i32_0 = arith.constant 0 : i32
    %c0_i32_1 = arith.constant 0 : i32
    return %c0_i32, %c0_i32_0 : i32, i32
  }
  func.func @transform_4(%arg0: i32) -> (i32, i32) {
    %c0_i32 = arith.constant 0 : i32
    %c0_i32_0 = arith.constant 0 : i32
    %c0_i32_1 = arith.constant 0 : i32
    return %c0_i32, %c0_i32_0 : i32, i32
  }
  func.func @transform_5(%arg0: i32) -> (i32, i32) {
    %c0_i32 = arith.constant 0 : i32
    %c0_i32_0 = arith.constant 0 : i32
    %c0_i32_1 = arith.constant 0 : i32
    return %c0_i32, %c0_i32_0 : i32, i32
  }
  func.func @transform_6(%arg0: i32) -> (i32, i32) {
    %c0_i32 = arith.constant 0 : i32
    %c0_i32_0 = arith.constant 0 : i32
    return %arg0, %c0_i32 : i32, i32
  }
}

</mosaic_0001>

<bundles_post_ra>
// kernel: tpu_custom_call.1
= control target key start
LH: loop header
LB: loop body
LE: loop exit
PB: predicated region body
PF: predicated region fallthrough
CT: control target
= control target key end

     0   :  { %11 = vsyncpa [#allocation3], 0  ;;  %s2985_s0 = inlined_call_operand.vmem [shape: bf16[512,32], index: 0, kind: input, shape index: {}]   ;;  %s2986_s1 = inlined_call_operand.vmem [shape: bf16[128,32], index: 1, kind: input, shape index: {}]   ;;  %s2987_s2 = inlined_call_operand.vmem [shape: f32[32,32], index: 2, kind: input, shape index: {}]   ;;  %s2988_s3 = inlined_call_operand.vmem [shape: f32[1,32], index: 3, kind: input, shape index: {}]   ;;  %s2989_s4 = inlined_call_operand.vmem [shape: bf16[32,128], index: 4, kind: input, shape index: {}]   ;;  %s2990_s5 = inlined_call_operand.vmem [shape: f32[1,128], index: 5, kind: input, shape index: {}]   ;;  %s2991_s6 = inlined_call_operand.hbm [shape: f32[16,128], index: 6, kind: output, shape index: {}]  }
   0x1   :  { %13 = vsyncpa [#allocation3 + $0x1], 0  ;;  %s2224_s21 = smov 0   ;;  %s2226_s22 = smov 0  }
   0x2   :  { %s2228_s23 = smov 0   ;;  %s2230_s24 = smov 0  }
   0x3 LB: > { %s2245_s25 = sadd.s32 4294967295, %s2184_s24   ;;  %s1724_s26 = sadd.s32 4294967294, %s2184_s24   ;;  %s2184_s24 = sphi %s2230_s24, %s3001_s24   ;;  %s2180_s23 = sphi %s2228_s23, %s3000_s23   ;;  %s2176_s22 = sphi %s2226_s22, %s2999_s22   ;;  %s2172_s21 = sphi %s2224_s21, %s2998_s21  }
   0x4   : > { %s2249_s27 = sadd.s32 1, %s2184_s24   ;;  %s157_s28 = sadd.s32 1, %s2180_s23 }
   0x5   : > { %s154_s29 = ssub.s32 %s2184_s24, %s2249_s27  ;;  %p167_p0 = scmp.ne.s32.totalorder %s2180_s23, %s2176_s22 }
   0x6   : > { %p155_p1 = scmp.eq.s32.totalorder %s154_s29, 0  ;;  %p168_p2 = scmp.eq.s32.totalorder %s2245_s25, 1 }
   0x7   : > { %p173_p3 = scmp.ne.s32.totalorder %s2176_s22, %s2172_s21  ;;  %p174_p4 = scmp.eq.s32.totalorder %s1724_s26, 1 }
   0x8   : > { %s2260_s30 = scalar_select %p155_p1, %s2180_s23, %s157_s28  }
   0x9   : > { %p2262_p5 = por %p168_p2, %p167_p0  ;;  %p2266_p6 = por %p174_p4, %p173_p3 }
   0xa   : > { %p1727_p7 = scmp.ge.s32.totalorder %s2184_s24, 1  ;;  %p216_p8 = scmp.lt.s32.totalorder %s2184_s24, 3 }
   0xc   : > { %p217_p9 = pnand %p1727_p7, %p216_p8 }
   0xd   : > { %v2096_v0 = vld [vmem:[%s2986_s1 + $0x10] sm:$0xff] (!%p217_p9)   ;;  %s1729_s11 = sshll.u32 (!%p217_p9), %s2245_s25, 5  ;;  %v2097_v1 = vld [vmem:[%s2986_s1] sm:$0xff] (!%p217_p9)   ;;  %v2098_v2 = vld [vmem:[%s2986_s1 + $0x18] sm:$0xff] (!%p217_p9)   ;;  %vm385_vm0 = vcmask (!%p217_p9), 261120   ;;  %v627_v24 = vlaneseq (!%p217_p9)  ;;  %v2186_v51 = vmov (!%p217_p9), 0.0  }
   0xe   : > { %220 = sbr.rel (%p217_p9) target bundleno = 652 (0x28c), region = 44  ;;  %p247_p10 = scmp.lt.s32.totalorder (!%p217_p9), %s1729_s11, 63  ;;  %1903 = vmatprep.subr.bf16.mxu0 (!%p217_p9), %v2096_v0  ;;  %1939 = vmatprep.subr.bf16.mxu1 (!%p217_p9), %v2097_v1  ;;  %v2099_v3 = vld [vmem:[%s2986_s1 + $0x8] sm:$0xff] (!%p217_p9)   ;;  %v2102_v4 = vld [vmem:[%s2986_s1 + $0x20] sm:$0xff] (!%p217_p9)   ;;  %v2103_v5 = vld [vmem:[%s2986_s1 + $0x30] sm:$0xff] (!%p217_p9)   ;;  %vm2187_vm2 = vmmov (!%p217_p9), 0  }
   0xf   : > { %1904 = vmatpush3.bf16.msra.mxu0 (!%p217_p9), %v2096_v0  ;;  %1940 = vmatpush3.bf16.msra.mxu1 (!%p217_p9), %v2097_v1  ;;  %v2112_v7 = vld [vmem:[%s2986_s1 + $0x28] sm:$0xff] (!%p217_p9)   ;;  %v2113_v12 = vld [vmem:[%s2986_s1 + $0x38] sm:$0xff] (!%p217_p9)   ;;  %v2382_v25 = vshrl.u32 (!%p217_p9), %v627_v24, 7  ;;  %v2120_v47 = vld [vmem:[%s2989_s4] sm:$0xff] (!%p217_p9)   ;;  %vm1574_vm5 = vcmask (!%p217_p9), 1041409   ;;  %vm1577_vm6 = vcmask (!%p217_p9), 1042434  }
  0x10   : > { %1905 = vmatprep.subr.bf16.mxu0 (!%p217_p9), %v2098_v2  ;;  %1941 = vmatprep.subr.bf16.mxu1 (!%p217_p9), %v2099_v3  ;;  %vm1580_vm7 = vcmask (!%p217_p9), 1043459   ;;  %vm1583_vm8 = vcmask (!%p217_p9), 1044484   ;;  %vm1586_vm9 = vcmask (!%p217_p9), 1045509   ;;  %vm1589_vm10 = vcmask (!%p217_p9), 1046534   ;;  %s243_s14 = sand.u32 (!%p217_p9), 1, %s2176_s22   ;;  %s1825_s18 = sshll.u32 (!%p217_p9), %s2245_s25, 7 }
  0x11   : > { %vm629_vm1 = vcmp.lt.s32.totalorder (!%p217_p9), %v2382_v25, 7  ;;  %vm1044_vm3 = vcmp.lt.s32.totalorder (!%p217_p9), %v2382_v25, 6  ;;  %vm1318_vm4 = vcmp.lt.s32.totalorder (!%p217_p9), %v2382_v25, 5  ;;  %vm1592_vm11 = vcmask (!%p217_p9), 1047559   ;;  %s1728_s15 = sshll.u32 (!%p217_p9), %s243_s14, 3  ;;  %s1652_s9 = scalar_lea.sflag (!%p217_p9), [#allocation3], %s243_s14 }
  0x12   : > { %s245_s19 = scalar_lea.vmem (!%p217_p9), [#allocation2], %s1728_s15  ;;  %s2188_s10 = smov (!%p217_p9), [#allocation2]  }
  0x13   : > { %1906 = vmatpush3.bf16.msra.mxu0 (!%p217_p9), %v2098_v2  ;;  %1942 = vmatpush3.bf16.msra.mxu1 (!%p217_p9), %v2099_v3  ;;  %s2126_s12 = sshll.u32 (!%p217_p9), %s2188_s10, 4  ;;  %s2127_s12 = int_to_ptr.vmem [resolvable:$false] %s2126_s12 }
  0x14   : > { %1975 = vmatprep.subr.bf16.mxu0 (!%p217_p9), %v2102_v4  ;;  %2011 = vmatprep.subr.bf16.mxu1 (!%p217_p9), %v2103_v5  ;;  %s2128_s13 = scalar_lea.vmem (!%p217_p9), %s2127_s12, 256 }
  0x15   : > { %s3003_s11 = smov (!%p247_p10, %s1729_s11), 63 }
  0x16   : > { %s1730_s20 = sshll.u32 %s3003_s11, 2 }
  0x17   : > { %s2291_s29 = scalar_lea.vmem %s2985_s0, %s1730_s20  ;;  %s1665_s20 = sshll.u32 %s245_s19, 4  ;;  %s2945_s20 = int_to_ptr.vmem [resolvable:$true] %s1665_s20 }
  0x18   : > { %v2100_v6 = vld [vmem:[%s2291_s29] sm:$0xff]   ;;  %v2101_v8 = vld [vmem:[%s2291_s29 + $0x8] sm:$0xff]   ;;  %v2104_v9 = vld [vmem:[%s2291_s29 + $0x10] sm:$0xff]   ;;  %s2122_s25 = scalar_lea.vmem %s2945_s20, 128  ;;  %p2129_p0 = scmp.lt.s32.totalorder %s2945_s20, %s2127_s12 }
  0x19   : > { %1907 = vmatprep.mubr.msk.bf16.mxu0 %vm385_vm0, %v2100_v6  ;;  %1943 = vmatprep.mubr.msk.bf16.mxu1 %vm385_vm0, %v2100_v6  ;;  %v2105_v10 = vld [vmem:[%s2291_s29 + $0x18] sm:$0xff]   ;;  %v2106_v11 = vld [vmem:[%s2291_s29 + $0x20] sm:$0xff]   ;;  %v2107_v13 = vld [vmem:[%s2291_s29 + $0x28] sm:$0xff]   ;;  %p2123_p11 = scmp.ne.s32.totalorder %s2945_s20, %s2122_s25  ;;  %p2130_p1 = scmp.lt.s32.totalorder %s2128_s13, %s2122_s25 }
  0x1a   : > { %1908 = vmatmul.mubr.msk.bf16.vlgmr.msra.gmra.mrb[0].mxu0 %vm385_vm0, %v2101_v8  ;;  %1944 = vmatmul.mubr.msk.bf16.vlgmr.msra.gmra.mrb[0].mxu1 %vm385_vm0, %v2101_v8  ;;  %v2108_v14 = vld [vmem:[%s2291_s29 + $0x30] sm:$0xff]   ;;  %v2109_v15 = vld [vmem:[%s2291_s29 + $0x38] sm:$0xff]   ;;  %v2110_v16 = vld [vmem:[%s2291_s29 + $0x40] sm:$0xff]  }
  0x1b   : > { %1976 = vmatpush3.bf16.msra.mxu0 %v2102_v4  ;;  %2012 = vmatpush3.bf16.msra.mxu1 %v2103_v5  ;;  %v2111_v17 = vld [vmem:[%s2291_s29 + $0x48] sm:$0xff]   ;;  %v2114_v18 = vld [vmem:[%s2291_s29 + $0x50] sm:$0xff]   ;;  %v2115_v19 = vld [vmem:[%s2291_s29 + $0x58] sm:$0xff]   ;;  %p2124_p12 = pnand %p2123_p11, %p2262_p5  ;;  %p2131_p2 = por %p2130_p1, %p2129_p0 }
  0x1c   : > { %1911 = vmatprep.mubr.msk.bf16.mxu0 %vm385_vm0, %v2104_v9  ;;  %1947 = vmatprep.mubr.msk.bf16.mxu1 %vm385_vm0, %v2104_v9  ;;  %v2116_v20 = vld [vmem:[%s2291_s29 + $0x60] sm:$0xff]   ;;  %v2117_v21 = vld [vmem:[%s2291_s29 + $0x68] sm:$0xff]   ;;  %v2118_v22 = vld [vmem:[%s2291_s29 + $0x70] sm:$0xff]  }
  0x1d   : > { %1977 = vmatprep.subr.bf16.mxu0 %v2112_v7  ;;  %2013 = vmatprep.subr.bf16.mxu1 %v2113_v12  ;;  %v2119_v23 = vld [vmem:[%s2291_s29 + $0x78] sm:$0xff]   ;;  %s2943_s29 = scalar_lea.hbm %s2991_s6, %s1825_s18  ;;  %p2125_p13 = pneg %p2124_p12 }
  0x1f   : > { %1978 = vmatpush3.bf16.msra.mxu0 %v2112_v7  ;;  %2014 = vmatpush3.bf16.msra.mxu1 %v2113_v12  ;;  %p2132_p3 = pnand %p2131_p2, %p2125_p13 }
  0x20   : > { %2047 = vmatprep.subr.bf16.mxu0 %v2186_v51 }
  0x22   : > { %1912 = vmatmul.mubr.msk.bf16.gmra.mrb[4].mxu0 %vm385_vm0, %v2105_v10  ;;  %1948 = vmatmul.mubr.msk.bf16.gmra.mrb[4].mxu1 %vm385_vm0, %v2105_v10 }
  0x23   : > { %1915 = vmatprep.mubr.msk.bf16.mxu0 %vm385_vm0, %v2106_v11  ;;  %1951 = vmatprep.mubr.msk.bf16.mxu1 %vm385_vm0, %v2106_v11 }
  0x2a   : > { %1916 = vmatmul.mubr.msk.bf16.gmra.mrb[8].mxu0 %vm385_vm0, %v2107_v13  ;;  %1952 = vmatmul.mubr.msk.bf16.gmra.mrb[8].mxu1 %vm385_vm0, %v2107_v13 }
  0x2b   : > { %1919 = vmatprep.mubr.msk.bf16.mxu0 %vm385_vm0, %v2108_v14  ;;  %1955 = vmatprep.mubr.msk.bf16.mxu1 %vm385_vm0, %v2108_v14 }
  0x32   : > { %1920 = vmatmul.mubr.msk.bf16.gmra.mrb[12].mxu0 %vm385_vm0, %v2109_v15  ;;  %1956 = vmatmul.mubr.msk.bf16.gmra.mrb[12].mxu1 %vm385_vm0, %v2109_v15 }
  0x33   : > { %1923 = vmatprep.mubr.msk.bf16.mxu0 %vm385_vm0, %v2110_v16  ;;  %1959 = vmatprep.mubr.msk.bf16.mxu1 %vm385_vm0, %v2110_v16 }
  0x3a   : > { %1924 = vmatmul.mubr.msk.bf16.gmra.mrb[16].mxu0 %vm385_vm0, %v2111_v17  ;;  %1960 = vmatmul.mubr.msk.bf16.gmra.mrb[16].mxu1 %vm385_vm0, %v2111_v17 }
  0x3b   : > { %1927 = vmatprep.mubr.msk.bf16.mxu0 %vm385_vm0, %v2114_v18  ;;  %1963 = vmatprep.mubr.msk.bf16.mxu1 %vm385_vm0, %v2114_v18 }
  0x42   : > { %1928 = vmatmul.mubr.msk.bf16.gmra.mrb[20].mxu0 %vm385_vm0, %v2115_v19  ;;  %1964 = vmatmul.mubr.msk.bf16.gmra.mrb[20].mxu1 %vm385_vm0, %v2115_v19 }
  0x43   : > { %1931 = vmatprep.mubr.msk.bf16.mxu0 %vm385_vm0, %v2116_v20  ;;  %1967 = vmatprep.mubr.msk.bf16.mxu1 %vm385_vm0, %v2116_v20 }
  0x4a   : > { %1932 = vmatmul.mubr.msk.bf16.gmra.mrb[24].mxu0 %vm385_vm0, %v2117_v21  ;;  %1968 = vmatmul.mubr.msk.bf16.gmra.mrb[24].mxu1 %vm385_vm0, %v2117_v21 }
  0x4b   : > { %1935 = vmatprep.mubr.msk.bf16.mxu0 %vm385_vm0, %v2118_v22  ;;  %1971 = vmatprep.mubr.msk.bf16.mxu1 %vm385_vm0, %v2118_v22 }
  0x52   : > { %1936 = vmatmul.mubr.msk.bf16.gmra.mrb[28].mxu0 %vm385_vm0, %v2119_v23  ;;  %1972 = vmatmul.mubr.msk.bf16.gmra.mrb[28].mxu1 %vm385_vm0, %v2119_v23 }
  0x53   : > { %1979 = vmatprep.mubr.msk.bf16.mxu0 %vm385_vm0, %v2100_v6  ;;  %2015 = vmatprep.mubr.msk.bf16.mxu1 %vm385_vm0, %v2100_v6 }
  0x5a   : > { %1980 = vmatmul.mubr.msk.bf16.vlgmr.msra.gmra.mrb[32].mxu0 %vm385_vm0, %v2101_v8  ;;  %2016 = vmatmul.mubr.msk.bf16.vlgmr.msra.gmra.mrb[32].mxu1 %vm385_vm0, %v2101_v8 }
  0x5b   : > { %1983 = vmatprep.mubr.msk.bf16.mxu0 %vm385_vm0, %v2104_v9  ;;  %2019 = vmatprep.mubr.msk.bf16.mxu1 %vm385_vm0, %v2104_v9 }
  0x5c   : > { %2048 = vmatpush3.bf16.msra.mxu0 %v2120_v47 }
  0x5d   : > { %2049 = vmatprep.subr.bf16.mxu0 %v2186_v51 }
  0x62   : > { %1984 = vmatmul.mubr.msk.bf16.gmra.mrb[36].mxu0 %vm385_vm0, %v2105_v10  ;;  %2020 = vmatmul.mubr.msk.bf16.gmra.mrb[36].mxu1 %vm385_vm0, %v2105_v10 }
  0x63   : > { %1987 = vmatprep.mubr.msk.bf16.mxu0 %vm385_vm0, %v2106_v11  ;;  %2023 = vmatprep.mubr.msk.bf16.mxu1 %vm385_vm0, %v2106_v11 }
  0x6a   : > { %1988 = vmatmul.mubr.msk.bf16.gmra.mrb[40].mxu0 %vm385_vm0, %v2107_v13  ;;  %2024 = vmatmul.mubr.msk.bf16.gmra.mrb[40].mxu1 %vm385_vm0, %v2107_v13 }
  0x6b   : > { %1991 = vmatprep.mubr.msk.bf16.mxu0 %vm385_vm0, %v2108_v14  ;;  %2027 = vmatprep.mubr.msk.bf16.mxu1 %vm385_vm0, %v2108_v14 }
  0x72   : > { %1992 = vmatmul.mubr.msk.bf16.gmra.mrb[44].mxu0 %vm385_vm0, %v2109_v15  ;;  %2028 = vmatmul.mubr.msk.bf16.gmra.mrb[44].mxu1 %vm385_vm0, %v2109_v15 }
  0x73   : > { %1995 = vmatprep.mubr.msk.bf16.mxu0 %vm385_vm0, %v2110_v16  ;;  %2031 = vmatprep.mubr.msk.bf16.mxu1 %vm385_vm0, %v2110_v16 }
  0x7a   : > { %1996 = vmatmul.mubr.msk.bf16.gmra.mrb[48].mxu0 %vm385_vm0, %v2111_v17  ;;  %2032 = vmatmul.mubr.msk.bf16.gmra.mrb[48].mxu1 %vm385_vm0, %v2111_v17 }
  0x7b   : > { %1999 = vmatprep.mubr.msk.bf16.mxu0 %vm385_vm0, %v2114_v18  ;;  %2035 = vmatprep.mubr.msk.bf16.mxu1 %vm385_vm0, %v2114_v18 }
  0x82   : > { %2000 = vmatmul.mubr.msk.bf16.gmra.mrb[52].mxu0 %vm385_vm0, %v2115_v19  ;;  %2036 = vmatmul.mubr.msk.bf16.gmra.mrb[52].mxu1 %vm385_vm0, %v2115_v19 }
  0x83   : > { %2003 = vmatprep.mubr.msk.bf16.mxu0 %vm385_vm0, %v2116_v20  ;;  %2039 = vmatprep.mubr.msk.bf16.mxu1 %vm385_vm0, %v2116_v20 }
  0x8a   : > { %2004 = vmatmul.mubr.msk.bf16.gmra.mrb[56].mxu0 %vm385_vm0, %v2117_v21  ;;  %2040 = vmatmul.mubr.msk.bf16.gmra.mrb[56].mxu1 %vm385_vm0, %v2117_v21 }
  0x8b   : > { %2007 = vmatprep.mubr.msk.bf16.mxu0 %vm385_vm0, %v2118_v22  ;;  %2043 = vmatprep.mubr.msk.bf16.mxu1 %vm385_vm0, %v2118_v22 }
  0x92   : > { %2008 = vmatmul.mubr.msk.bf16.gmra.mrb[60].mxu0 %vm385_vm0, %v2119_v23  ;;  %2044 = vmatmul.mubr.msk.bf16.gmra.mrb[60].mxu1 %vm385_vm0, %v2119_v23 }
  0x93   : > { %2051 = vmatprep.mubr.msk.bf16.mxu0 %vm2187_vm2, %v2186_v51 }
  0xed   : > { %v1909_v26 = vpop.f32.mrb[0].mxu0  ;;  %v1945_v27 = vpop.f32.mrb[0].mxu1 }
  0xee   : > { %v2384_v28 = vpop.f32.mrb[1].mxu0  ;;  %v708_v29 = vpop.f32.mrb[1].mxu1  ;;  %v597_v31 = vrot.slane %v1909_v26, 1 }
  0xef   : > { %v1910_v30 = vpop.f32.mrb[2].mxu0  ;;  %v1946_v33 = vpop.f32.mrb[2].mxu1  ;;  %v595_v35 = vrot.slane %v2384_v28, 1 }
  0xf0   : > { %v598_v32 = vrot.slane %v1910_v30, 1  ;;  %v471_v34 = vpop.f32.mrb[3].mxu0  ;;  %v711_v37 = vpop.f32.mrb[3].mxu1 }
  0xf1   : > { %v596_v36 = vrot.slane %v471_v34, 1 }
  0xf2   : > { %v658_v38 = vsel %vm629_vm1, %v597_v31, %v598_v32 }
  0xf3   : > { %v2390_v39 = vadd.f32 %v1945_v27, %v658_v38  ;;  %v660_v40 = vsel %vm629_vm1, %v595_v35, %v596_v36  ;;  %v659_v41 = vsel %vm629_vm1, %v596_v36, %v597_v31 }
  0xf4   : > { %v2398_v42 = vadd.f32 %v708_v29, %v660_v40  ;;  %v2400_v43 = vadd.f32 %v711_v37, %v659_v41 }
  0xf5   : > { %v1913_v44 = vpop.f32.mrb[4].mxu0  ;;  %v1949_v45 = vpop.f32.mrb[4].mxu1 }
  0xf6   : > { %v484_v46 = vpop.f32.mrb[5].mxu0  ;;  %v724_v49 = vpop.f32.mrb[5].mxu1  ;;  %v601_v52 = vrot.slane %v1913_v44, 1 }
  0xf7   : > { %v599_v48 = vrot.slane %v484_v46, 1  ;;  %v1914_v50 = vpop.f32.mrb[6].mxu0  ;;  %v1950_v54 = vpop.f32.mrb[6].mxu1 }
  0xf8   : > { %v602_v53 = vrot.slane %v1914_v50, 1  ;;  %v487_v55 = vpop.f32.mrb[7].mxu0  ;;  %v727_v58 = vpop.f32.mrb[7].mxu1 }
  0xf9   : > { %v657_v56 = vsel %vm629_vm1, %v598_v32, %v599_v48  ;;  %v600_v57 = vrot.slane %v487_v55, 1 }
  0xfa   : > { %v2409_v59 = vadd.f32 %v1946_v33, %v657_v56  ;;  %v654_v60 = vsel %vm629_vm1, %v601_v52, %v602_v53 }
  0xfb   : > { %v2413_v61 = vadd.f32 %v1949_v45, %v654_v60  ;;  %v656_v62 = vsel %vm629_vm1, %v599_v48, %v600_v57  ;;  %v655_v63 = vsel %vm629_vm1, %v600_v57, %v601_v52 }
  0xfc   : > { %v2419_v0 = vadd.f32 %v724_v49, %v656_v62  ;;  %v2421_v1 = vadd.f32 %v727_v58, %v655_v63 }
  0xfd   : > { %v1917_v2 = vpop.f32.mrb[8].mxu0  ;;  %v1953_v3 = vpop.f32.mrb[8].mxu1 }
  0xfe   : > { %v500_v4 = vpop.f32.mrb[9].mxu0  ;;  %v740_v6 = vpop.f32.mrb[9].mxu1  ;;  %v605_v8 = vrot.slane %v1917_v2, 1 }
  0xff   : > { %v603_v5 = vrot.slane %v500_v4, 1  ;;  %v1918_v7 = vpop.f32.mrb[10].mxu0  ;;  %v1954_v10 = vpop.f32.mrb[10].mxu1 }
 0x100   : > { %v606_v9 = vrot.slane %v1918_v7, 1  ;;  %v503_v11 = vpop.f32.mrb[11].mxu0  ;;  %v743_v14 = vpop.f32.mrb[11].mxu1 }
 0x101   : > { %v653_v12 = vsel %vm629_vm1, %v602_v53, %v603_v5  ;;  %v604_v13 = vrot.slane %v503_v11, 1 }
 0x102   : > { %v2425_v15 = vadd.f32 %v1950_v54, %v653_v12  ;;  %v650_v16 = vsel %vm629_vm1, %v605_v8, %v606_v9 }
 0x103   : > { %v2429_v17 = vadd.f32 %v1953_v3, %v650_v16  ;;  %v652_v18 = vsel %vm629_vm1, %v603_v5, %v604_v13  ;;  %v651_v19 = vsel %vm629_vm1, %v604_v13, %v605_v8 }
 0x104   : > { %v2435_v20 = vadd.f32 %v740_v6, %v652_v18  ;;  %v2437_v21 = vadd.f32 %v743_v14, %v651_v19 }
 0x105   : > { %v1921_v22 = vpop.f32.mrb[12].mxu0  ;;  %v1957_v23 = vpop.f32.mrb[12].mxu1 }
 0x106   : > { %v516_v24 = vpop.f32.mrb[13].mxu0  ;;  %v756_v27 = vpop.f32.mrb[13].mxu1  ;;  %v609_v30 = vrot.slane %v1921_v22, 1 }
 0x107   : > { %v607_v26 = vrot.slane %v516_v24, 1  ;;  %v1922_v29 = vpop.f32.mrb[14].mxu0  ;;  %v1958_v32 = vpop.f32.mrb[14].mxu1 }
 0x108   : > { %v610_v31 = vrot.slane %v1922_v29, 1  ;;  %v519_v33 = vpop.f32.mrb[15].mxu0  ;;  %v759_v37 = vpop.f32.mrb[15].mxu1 }
 0x109   : > { %v649_v34 = vsel %vm629_vm1, %v606_v9, %v607_v26  ;;  %v608_v36 = vrot.slane %v519_v33, 1 }
 0x10a   : > { %v2441_v38 = vadd.f32 %v1954_v10, %v649_v34  ;;  %v646_v40 = vsel %vm629_vm1, %v609_v30, %v610_v31 }
 0x10b   : > { %v2445_v41 = vadd.f32 %v1957_v23, %v646_v40  ;;  %v648_v44 = vsel %vm629_vm1, %v607_v26, %v608_v36  ;;  %v647_v45 = vsel %vm629_vm1, %v608_v36, %v609_v30 }
 0x10c   : > { %v2451_v46 = vadd.f32 %v756_v27, %v648_v44  ;;  %v2453_v47 = vadd.f32 %v759_v37, %v647_v45 }
 0x10d   : > { %v1925_v48 = vpop.f32.mrb[16].mxu0  ;;  %v1961_v49 = vpop.f32.mrb[16].mxu1 }
 0x10e   : > { %v532_v50 = vpop.f32.mrb[17].mxu0  ;;  %v772_v53 = vpop.f32.mrb[17].mxu1  ;;  %v613_v55 = vrot.slane %v1925_v48, 1 }
 0x10f   : > { %v611_v52 = vrot.slane %v532_v50, 1  ;;  %v1926_v54 = vpop.f32.mrb[18].mxu0  ;;  %v1962_v57 = vpop.f32.mrb[18].mxu1 }
 0x110   : > { %v614_v56 = vrot.slane %v1926_v54, 1  ;;  %v535_v58 = vpop.f32.mrb[19].mxu0  ;;  %v775_v63 = vpop.f32.mrb[19].mxu1 }
 0x111   : > { %v645_v60 = vsel %vm629_vm1, %v610_v31, %v611_v52  ;;  %v612_v62 = vrot.slane %v535_v58, 1 }
 0x112   : > { %v2457_v2 = vadd.f32 %v1958_v32, %v645_v60  ;;  %v642_v3 = vsel %vm629_vm1, %v613_v55, %v614_v56 }
 0x113   : > { %v2461_v4 = vadd.f32 %v1961_v49, %v642_v3  ;;  %v644_v5 = vsel %vm629_vm1, %v611_v52, %v612_v62  ;;  %v643_v6 = vsel %vm629_vm1, %v612_v62, %v613_v55  ;;  %v2121_v49 = vld [vmem:[%s2989_s4 + $0x8] sm:$0xff]  }
 0x114   : > { %v2467_v7 = vadd.f32 %v772_v53, %v644_v5  ;;  %v2469_v8 = vadd.f32 %v775_v63, %v643_v6  ;;  %2050 = vmatpush3.bf16.msra.mxu0 %v2121_v49 }
 0x115   : > { %v1929_v9 = vpop.f32.mrb[20].mxu0  ;;  %v1965_v10 = vpop.f32.mrb[20].mxu1 }
 0x116   : > { %v548_v11 = vpop.f32.mrb[21].mxu0  ;;  %v788_v13 = vpop.f32.mrb[21].mxu1  ;;  %v617_v16 = vrot.slane %v1929_v9, 1 }
 0x117   : > { %v615_v12 = vrot.slane %v548_v11, 1  ;;  %v1930_v14 = vpop.f32.mrb[22].mxu0  ;;  %v1966_v19 = vpop.f32.mrb[22].mxu1 }
 0x118   : > { %v618_v18 = vrot.slane %v1930_v14, 1  ;;  %v551_v22 = vpop.f32.mrb[23].mxu0  ;;  %v791_v26 = vpop.f32.mrb[23].mxu1 }
 0x119   : > { %v641_v23 = vsel %vm629_vm1, %v614_v56, %v615_v12  ;;  %v616_v24 = vrot.slane %v551_v22, 1 }
 0x11a   : > { %v2473_v27 = vadd.f32 %v1962_v57, %v641_v23  ;;  %v638_v29 = vsel %vm629_vm1, %v617_v16, %v618_v18 }
 0x11b   : > { %v2477_v30 = vadd.f32 %v1965_v10, %v638_v29  ;;  %v640_v31 = vsel %vm629_vm1, %v615_v12, %v616_v24  ;;  %v639_v32 = vsel %vm629_vm1, %v616_v24, %v617_v16 }
 0x11c   : > { %v2483_v33 = vadd.f32 %v788_v13, %v640_v31  ;;  %v2485_v34 = vadd.f32 %v791_v26, %v639_v32 }
 0x11d   : > { %v1933_v36 = vpop.f32.mrb[24].mxu0  ;;  %v1969_v37 = vpop.f32.mrb[24].mxu1 }
 0x11e   : > { %v564_v40 = vpop.f32.mrb[25].mxu0  ;;  %v804_v45 = vpop.f32.mrb[25].mxu1  ;;  %v621_v50 = vrot.slane %v1933_v36, 1 }
 0x11f   : > { %v619_v44 = vrot.slane %v564_v40, 1  ;;  %v1934_v48 = vpop.f32.mrb[26].mxu0  ;;  %v1970_v53 = vpop.f32.mrb[26].mxu1 }
 0x120   : > { %v622_v52 = vrot.slane %v1934_v48, 1  ;;  %v567_v54 = vpop.f32.mrb[27].mxu0  ;;  %v807_v57 = vpop.f32.mrb[27].mxu1 }
 0x121   : > { %v637_v55 = vsel %vm629_vm1, %v618_v18, %v619_v44  ;;  %v620_v56 = vrot.slane %v567_v54, 1 }
 0x122   : > { %v2493_v58 = vadd.f32 %v1966_v19, %v637_v55  ;;  %v634_v60 = vsel %vm629_vm1, %v621_v50, %v622_v52 }
 0x123   : > { %v2497_v62 = vadd.f32 %v1969_v37, %v634_v60  ;;  %v636_v63 = vsel %vm629_vm1, %v619_v44, %v620_v56  ;;  %v635_v3 = vsel %vm629_vm1, %v620_v56, %v621_v50 }
 0x124   : > { %v2503_v51 = vadd.f32 %v804_v45, %v636_v63  ;;  %v2505_v5 = vadd.f32 %v807_v57, %v635_v3 }
 0x125   : > { %v1937_v6 = vpop.f32.mrb[28].mxu0  ;;  %v1973_v9 = vpop.f32.mrb[28].mxu1 }
 0x126   : > { %v580_v10 = vpop.f32.mrb[29].mxu0  ;;  %v820_v12 = vpop.f32.mrb[29].mxu1  ;;  %v625_v14 = vrot.slane %v1937_v6, 1 }
 0x127   : > { %v623_v11 = vrot.slane %v580_v10, 1  ;;  %v1938_v13 = vpop.f32.mrb[30].mxu0  ;;  %v1974_v18 = vpop.f32.mrb[30].mxu1 }
 0x128   : > { %v626_v16 = vrot.slane %v1938_v13, 1  ;;  %v583_v19 = vpop.f32.mrb[31].mxu0  ;;  %v823_v24 = vpop.f32.mrb[31].mxu1 }
 0x129   : > { %v633_v22 = vsel %vm629_vm1, %v622_v52, %v623_v11  ;;  %v624_v23 = vrot.slane %v583_v19, 1 }
 0x12a   : > { %v2509_v26 = vadd.f32 %v1970_v53, %v633_v22  ;;  %v630_v29 = vsel %vm629_vm1, %v625_v14, %v626_v16  ;;  %v661_v31 = vsel %vm629_vm1, %v626_v16, %v595_v35  ;;  %v2551_v16 = vld [vmem:[%s2987_s2 + $0x10] sm:$0xff] }
 0x12b   : > { %v2517_v32 = vadd.f32 %v1973_v9, %v630_v29  ;;  %v2519_v36 = vadd.f32 %v1974_v18, %v661_v31  ;;  %v632_v37 = vsel %vm629_vm1, %v623_v11, %v624_v23  ;;  %v631_v40 = vsel %vm629_vm1, %v624_v23, %v625_v14 }
 0x12c   : > { %v2525_v44 = vadd.f32 %v820_v12, %v632_v37  ;;  %v2527_v45 = vadd.f32 %v823_v24, %v631_v40  ;;  %v2564_v24 = vld [vmem:[%s2987_s2] sm:$0xff] }
 0x12d   : > { %v1981_v48 = vpop.f32.mrb[32].mxu0  ;;  %v2017_v49 = vpop.f32.mrb[32].mxu1 }
 0x12e   : > { %v2529_v28 = vpop.f32.mrb[33].mxu0  ;;  %v1288_v50 = vrot.slane %v2017_v49, 3  ;;  %v2531_v35 = vpop.f32.mrb[33].mxu1  ;;  %v1014_v53 = vrot.slane %v1981_v48, 2 }
 0x12f   : > { %v1982_v52 = vpop.f32.mrb[34].mxu0  ;;  %v2992_v54 = vrot.slane %v2531_v35, 3  ;;  %v2018_v56 = vpop.f32.mrb[34].mxu1  ;;  %v2993_v60 = vrot.slane %v2529_v28, 2 }
 0x130   : > { %v1015_v55 = vrot.slane %v1982_v52, 2  ;;  %v888_v57 = vpop.f32.mrb[35].mxu0  ;;  %v1289_v63 = vrot.slane %v2018_v56, 3  ;;  %v1162_v6 = vpop.f32.mrb[35].mxu1 }
 0x131   : > { %v1013_v3 = vrot.slane %v888_v57, 2  ;;  %v1287_v10 = vrot.slane %v1162_v6, 3 }
 0x132   : > { %v1073_v9 = vsel %vm1044_vm3, %v1014_v53, %v1015_v55  ;;  %v1347_v12 = vsel %vm1318_vm4, %v1288_v50, %v1289_v63 }
 0x133   : > { %v1079_v11 = vadd.f32 %v1073_v9, %v2390_v39  ;;  %v1074_v13 = vsel %vm1044_vm3, %v1013_v3, %v1014_v53  ;;  %v1075_v14 = vsel %vm1044_vm3, %v2993_v60, %v1013_v3  ;;  %v1348_v19 = vsel %vm1318_vm4, %v1287_v10, %v1288_v50 }
 0x134   : > { %v1077_v18 = vadd.f32 %v1075_v14, %v2398_v42  ;;  %v1078_v39 = vadd.f32 %v1074_v13, %v2400_v43  ;;  %v1349_v22 = vsel %vm1318_vm4, %v2992_v54, %v1287_v10  ;;  %v2569_v42 = vld [vmem:[%s2987_s2 + $0x8] sm:$0xff] }
 0x135   : > { %v1353_v23 = vadd.f32 %v1347_v12, %v1079_v11  ;;  %v1985_v43 = vpop.f32.mrb[36].mxu0  ;;  %v2021_v37 = vpop.f32.mrb[36].mxu1 }
 0x136   : > { %v1351_v29 = vadd.f32 %v1349_v22, %v1077_v18  ;;  %v1352_v31 = vadd.f32 %v1348_v19, %v1078_v39  ;;  %v901_v40 = vpop.f32.mrb[37].mxu0  ;;  %v1018_v49 = vrot.slane %v1985_v43, 2  ;;  %v1292_v50 = vrot.slane %v2021_v37, 3  ;;  %v1175_v53 = vpop.f32.mrb[37].mxu1 }
 0x137   : > { %v1389_v48 = vadd.f32 %v2551_v16, %v1353_v23  ;;  %v1016_v52 = vrot.slane %v901_v40, 2  ;;  %v1986_v56 = vpop.f32.mrb[38].mxu0  ;;  %v1290_v6 = vrot.slane %v1175_v53, 3  ;;  %v2022_v10 = vpop.f32.mrb[38].mxu1 }
 0x138   : > { %v1387_v57 = vadd.f32 %v2564_v24, %v1351_v29  ;;  %v1388_v3 = vadd.f32 %v2569_v42, %v1352_v31  ;;  %v1019_v9 = vrot.slane %v1986_v56, 2  ;;  %v904_v11 = vpop.f32.mrb[39].mxu0  ;;  %v1293_v14 = vrot.slane %v2022_v10, 3  ;;  %v1178_v39 = vpop.f32.mrb[39].mxu1  ;;  %v2585_v31 = vld [vmem:[%s2987_s2 + $0x18] sm:$0xff] }
 0x139   : > { %v1422_v12 = vsel %vm385_vm0, %v1389_v48, -inf  ;;  %v1072_v13 = vsel %vm1044_vm3, %v1015_v55, %v1016_v52  ;;  %v1017_v18 = vrot.slane %v904_v11, 2  ;;  %v1346_v43 = vsel %vm1318_vm4, %v1289_v63, %v1290_v6 }
 0x13a   : > { %v1419_v19 = vsel %vm385_vm0, %v1387_v57, -inf  ;;  %v1420_v22 = vsel %vm385_vm0, %v1388_v3, -inf  ;;  %v1080_v23 = vadd.f32 %v1072_v13, %v2409_v59  ;;  %v1069_v55 = vsel %vm1044_vm3, %v1018_v49, %v1019_v9 }
 0x13b   : > { %v1421_v29 = vmax.f32 %v1419_v19, %v1420_v22  ;;  %v1343_v37 = vsel %vm1318_vm4, %v1292_v50, %v1293_v14  ;;  %v1070_v40 = vsel %vm1044_vm3, %v1017_v18, %v1018_v49  ;;  %v1083_v59 = vadd.f32 %v1069_v55, %v2413_v61 }
 0x13c   : > { %v1354_v48 = vadd.f32 %v1346_v43, %v1080_v23  ;;  %v1071_v63 = vsel %vm1044_vm3, %v1016_v52, %v1017_v18  ;;  %v1082_v53 = vadd.f32 %v1070_v40, %v2421_v1  ;;  %v1291_v3 = vrot.slane %v1178_v39, 3 }
 0x13d   : > { %v1423_v56 = vmax.f32 %v1421_v29, %v1422_v12  ;;  %v1081_v57 = vadd.f32 %v1071_v63, %v2419_v0  ;;  %v1989_v10 = vpop.f32.mrb[40].mxu0  ;;  %v1357_v13 = vadd.f32 %v1343_v37, %v1083_v59  ;;  %v2025_v22 = vpop.f32.mrb[40].mxu1 }
 0x13e   : > { %v1390_v11 = vadd.f32 %v2585_v31, %v1354_v48  ;;  %v1022_v19 = vrot.slane %v1989_v10, 2  ;;  %v917_v54 = vpop.f32.mrb[41].mxu0  ;;  %v1344_v49 = vsel %vm1318_vm4, %v1291_v3, %v1292_v50  ;;  %v1345_v61 = vsel %vm1318_vm4, %v1290_v6, %v1291_v3  ;;  %v1191_v1 = vpop.f32.mrb[41].mxu1 }
 0x13f   : > { %v1296_v52 = vrot.slane %v2025_v22, 3  ;;  %v1020_v18 = vrot.slane %v917_v54, 2  ;;  %v2603_v12 = vpop.f32.mrb[42].mxu0  ;;  %v1393_v39 = vadd.f32 %v2551_v16, %v1357_v13  ;;  %v1355_v23 = vadd.f32 %v1345_v61, %v1081_v57  ;;  %v2607_v29 = vpop.f32.mrb[42].mxu1 }
 0x140   : > { %v1424_v0 = vsel %vm385_vm0, %v1390_v11, -inf  ;;  %v1356_v43 = vadd.f32 %v1344_v49, %v1082_v53  ;;  %v920_v55 = vpop.f32.mrb[43].mxu0  ;;  %v1294_v40 = vrot.slane %v1191_v1, 3  ;;  %v1023_v6 = vrot.slane %v2603_v12, 2  ;;  %v1194_v54 = vpop.f32.mrb[43].mxu1 }
 0x141   : > { %v1425_v37 = vmax.f32 %v1423_v56, %v1424_v0  ;;  %v1068_v50 = vsel %vm1044_vm3, %v1019_v9, %v1020_v18  ;;  %v1435_v48 = vsel %vm385_vm0, %v1393_v39, -inf  ;;  %v1391_v59 = vadd.f32 %v2564_v24, %v1355_v23 }
 0x142   : > { %v1392_v63 = vadd.f32 %v2569_v42, %v1356_v43  ;;  %v1084_v57 = vadd.f32 %v1068_v50, %v2425_v15  ;;  %v1342_v3 = vsel %vm1318_vm4, %v1293_v14, %v1294_v40  ;;  %v1065_v56 = vsel %vm1044_vm3, %v1022_v19, %v1023_v6 }
 0x143   : > { %v1426_v53 = vrot.slane %v1425_v37, 4  ;;  %v1297_v9 = vrot.slane %v2607_v29, 3  ;;  %v1432_v10 = vsel %vm385_vm0, %v1391_v59, -inf  ;;  %v1087_v22 = vadd.f32 %v1065_v56, %v2429_v17 }
 0x144   : > { %v1433_v11 = vsel %vm385_vm0, %v1392_v63, -inf  ;;  %v1358_v13 = vadd.f32 %v1342_v3, %v1084_v57  ;;  %v1021_v1 = vrot.slane %v920_v55, 2  ;;  %v1295_v39 = vrot.slane %v1194_v54, 3 }
 0x145   : > { %v1427_v49 = vmax.f32 %v1425_v37, %v1426_v53  ;;  %v1434_v61 = vmax.f32 %v1432_v10, %v1433_v11  ;;  %v1339_v15 = vsel %vm1318_vm4, %v1296_v52, %v1297_v9  ;;  %v2626_v12 = vpop.f32.mrb[44].mxu0  ;;  %v2630_v43 = vpop.f32.mrb[44].mxu1 }
 0x146   : > { %v1394_v14 = vadd.f32 %v2585_v31, %v1358_v13  ;;  %v1361_v0 = vadd.f32 %v1339_v15, %v1087_v22  ;;  %v1026_v23 = vrot.slane %v2626_v12, 2  ;;  %v2632_v29 = vpop.f32.mrb[45].mxu0  ;;  %v1066_v37 = vsel %vm1044_vm3, %v1021_v1, %v1022_v19  ;;  %v2638_v59 = vpop.f32.mrb[45].mxu1 }
 0x147   : > { %v1428_v50 = vrot.slane %v1427_v49, 2  ;;  %v1436_v17 = vmax.f32 %v1434_v61, %v1435_v48  ;;  %v1067_v55 = vsel %vm1044_vm3, %v1020_v18, %v1021_v1  ;;  %v2640_v63 = vpop.f32.mrb[46].mxu0  ;;  %v1086_v3 = vadd.f32 %v1066_v37, %v2437_v21  ;;  %v2646_v56 = vpop.f32.mrb[46].mxu1 }
 0x148   : > { %v1437_v54 = vsel %vm385_vm0, %v1394_v14, -inf  ;;  %v1397_v57 = vadd.f32 %v2551_v16, %v1361_v0  ;;  %v1085_v53 = vadd.f32 %v1067_v55, %v2435_v20  ;;  %v936_v48 = vpop.f32.mrb[47].mxu0  ;;  %v1340_v18 = vsel %vm1318_vm4, %v1295_v39, %v1296_v52  ;;  %v1210_v13 = vpop.f32.mrb[47].mxu1  ;;  %v2659_v52 = vld [vmem:[%s2988_s3] ss:$0 sm:$0xff] }
 0x149   : > { %v1429_v10 = vmax.f32 %v1427_v49, %v1428_v50  ;;  %v1438_v19 = vmax.f32 %v1436_v17, %v1437_v54  ;;  %v1341_v11 = vsel %vm1318_vm4, %v1294_v40, %v1295_v39  ;;  %v1360_v15 = vadd.f32 %v1340_v18, %v1086_v3 }
 0x14a   : > { %v1448_v22 = vsel %vm385_vm0, %v1397_v57, -inf  ;;  %v1359_v61 = vadd.f32 %v1341_v11, %v1085_v53  ;;  %v1300_v20 = vrot.slane %v2630_v43, 3  ;;  %v1024_v14 = vrot.slane %v2632_v29, 2 }
 0x14b   : > { %v1430_v1 = vrot.slane %v1429_v10, 1  ;;  %v1439_v21 = vrot.slane %v1438_v19, 4  ;;  %v1298_v49 = vrot.slane %v2638_v59, 3  ;;  %v1396_v0 = vadd.f32 %v2569_v42, %v1360_v15 }
 0x14c   : > { %v1395_v40 = vadd.f32 %v2564_v24, %v1359_v61  ;;  %v1027_v39 = vrot.slane %v2640_v63, 2  ;;  %v1301_v50 = vrot.slane %v2646_v56, 3  ;;  %v1064_v29 = vsel %vm1044_vm3, %v1023_v6, %v1024_v14 }
 0x14d   : > { %v1431_v43 = vmax.f32 %v1429_v10, %v1430_v1  ;;  %v1440_v17 = vmax.f32 %v1438_v19, %v1439_v21  ;;  %v1338_v37 = vsel %vm1318_vm4, %v1297_v9, %v1298_v49  ;;  %v2669_v55 = vpop.f32.mrb[48].mxu0  ;;  %v1446_v54 = vsel %vm385_vm0, %v1396_v0, -inf  ;;  %v2678_v53 = vpop.f32.mrb[48].mxu1 }
 0x14e   : > { %v1445_v59 = vsel %vm385_vm0, %v1395_v40, -inf  ;;  %v1088_v57 = vadd.f32 %v1064_v29, %v2441_v38  ;;  %v1061_v63 = vsel %vm1044_vm3, %v1026_v23, %v1027_v39  ;;  %v2680_v3 = vpop.f32.mrb[49].mxu0  ;;  %v2684_v19 = vpop.f32.mrb[49].mxu1  ;;  %v1335_v11 = vsel %vm1318_vm4, %v1300_v20, %v1301_v50 }
 0x14f   : > { %v1530_v6 = vadd.f32 %v2659_v52, %v1431_v43  ;;  %v1441_v9 = vrot.slane %v1440_v17, 2  ;;  %v1447_v56 = vmax.f32 %v1445_v59, %v1446_v54  ;;  %v1091_v10 = vadd.f32 %v1061_v63, %v2445_v41  ;;  %v2686_v18 = vpop.f32.mrb[50].mxu0  ;;  %v2690_v1 = vpop.f32.mrb[50].mxu1 }
 0x150   : > { %v1362_v38 = vadd.f32 %v1338_v37, %v1088_v57  ;;  %v1025_v61 = vrot.slane %v936_v48, 2  ;;  %v1299_v15 = vrot.slane %v1210_v13, 3  ;;  %v952_v21 = vpop.f32.mrb[51].mxu0  ;;  %v2692_v59 = vpop.f32.mrb[51].mxu1 }
 0x151   : > { %v1538_v40 = vpack.c.bf16 %v1530_v6, %v1530_v6  ;;  %v1442_v0 = vmax.f32 %v1440_v17, %v1441_v9  ;;  %v1449_v43 = vmax.f32 %v1447_v56, %v1448_v22  ;;  %v1365_v29 = vadd.f32 %v1335_v11, %v1091_v10 }
 0x152   : > { %v1398_v41 = vadd.f32 %v2585_v31, %v1362_v38  ;;  %v1062_v37 = vsel %vm1044_vm3, %v1025_v61, %v1026_v23  ;;  %v1063_v48 = vsel %vm1044_vm3, %v1024_v14, %v1025_v61  ;;  %v1336_v13 = vsel %vm1318_vm4, %v1299_v15, %v1300_v20 }
 0x153   : > { %v1565_v54 = vunpack.c.l.b16 %v1538_v40  ;;  %v1443_v57 = vrot.slane %v1442_v0, 1  ;;  %v1401_v22 = vadd.f32 %v2551_v16, %v1365_v29  ;;  %v1089_v17 = vadd.f32 %v1063_v48, %v2451_v46 }
 0x154   : > { %v1450_v63 = vsel %vm385_vm0, %v1398_v41, -inf  ;;  %v1090_v12 = vadd.f32 %v1062_v37, %v2453_v47  ;;  %v1337_v23 = vsel %vm1318_vm4, %v1298_v49, %v1299_v15  ;;  %v1030_v6 = vrot.slane %v2669_v55, 2 }
 0x155   : > { %v1444_v14 = vmax.f32 %v1442_v0, %v1443_v57  ;;  %v1451_v9 = vmax.f32 %v1449_v43, %v1450_v63  ;;  %v1461_v20 = vsel %vm385_vm0, %v1401_v22, -inf  ;;  %v1363_v56 = vadd.f32 %v1337_v23, %v1089_v17  ;;  %v2711_v10 = vpop.f32.mrb[52].mxu0  ;;  %v2716_v47 = vpop.f32.mrb[52].mxu1 }
 0x156   : > { %v1364_v38 = vadd.f32 %v1336_v13, %v1090_v12  ;;  %v1304_v46 = vrot.slane %v2678_v53, 3  ;;  %v1028_v11 = vrot.slane %v2680_v3, 2  ;;  %v1302_v61 = vrot.slane %v2684_v19, 3  ;;  %v2718_v40 = vpop.f32.mrb[53].mxu0  ;;  %v2723_v43 = vpop.f32.mrb[53].mxu1 }
 0x157   : > { %v1531_v49 = vadd.f32 %v2659_v52, %v1444_v14  ;;  %v1452_v55 = vrot.slane %v1451_v9, 4  ;;  %v1399_v15 = vadd.f32 %v2564_v24, %v1363_v56  ;;  %v1031_v0 = vrot.slane %v2686_v18, 2  ;;  %v2725_v29 = vpop.f32.mrb[54].mxu0  ;;  %v2733_v37 = vpop.f32.mrb[54].mxu1 }
 0x158   : > { %v1400_v53 = vadd.f32 %v2569_v42, %v1364_v38  ;;  %v1060_v3 = vsel %vm1044_vm3, %v1027_v39, %v1028_v11  ;;  %v1334_v19 = vsel %vm1318_vm4, %v1301_v50, %v1302_v61  ;;  %v1305_v41 = vrot.slane %v2690_v1, 3  ;;  %v2735_v48 = vpop.f32.mrb[55].mxu0  ;;  %v2739_v17 = vpop.f32.mrb[55].mxu1 }
 0x159   : > { %v1539_v13 = vpack.c.bf16 %v1531_v49, %v1531_v49  ;;  %v1453_v18 = vmax.f32 %v1451_v9, %v1452_v55  ;;  %v1458_v57 = vsel %vm385_vm0, %v1399_v15, -inf  ;;  %v1092_v22 = vadd.f32 %v1060_v3, %v2457_v2 }
 0x15a   : > { %v1459_v63 = vsel %vm385_vm0, %v1400_v53, -inf  ;;  %v1057_v39 = vsel %vm1044_vm3, %v1030_v6, %v1031_v0  ;;  %v1331_v50 = vsel %vm1318_vm4, %v1304_v46, %v1305_v41  ;;  %v1029_v12 = vrot.slane %v952_v21, 2 }
 0x15b   : > { %v1566_v23 = vunpack.c.l.b16 %v1539_v13  ;;  %v1454_v14 = vrot.slane %v1453_v18, 2  ;;  %v1460_v9 = vmax.f32 %v1458_v57, %v1459_v63  ;;  %v1366_v56 = vadd.f32 %v1334_v19, %v1092_v22 }
 0x15c   : > { %v1095_v38 = vadd.f32 %v1057_v39, %v2461_v4  ;;  %v1058_v2 = vsel %vm1044_vm3, %v1029_v12, %v1030_v6  ;;  %v1059_v49 = vsel %vm1044_vm3, %v1028_v11, %v1029_v12  ;;  %v1303_v55 = vrot.slane %v2692_v59, 3 }
 0x15d   : > { %v1573_v15 = vrot.slane %v1566_v23, 7  ;;  %v1455_v53 = vmax.f32 %v1453_v18, %v1454_v14  ;;  %v1402_v3 = vadd.f32 %v2585_v31, %v1366_v56  ;;  %v1462_v60 = vmax.f32 %v1460_v9, %v1461_v20  ;;  %v2755_v21 = vpop.f32.mrb[56].mxu0  ;;  %v2761_v57 = vpop.f32.mrb[56].mxu1 }
 0x15e   : > { %v1369_v13 = vadd.f32 %v1331_v50, %v1095_v38  ;;  %v1093_v19 = vadd.f32 %v1059_v49, %v2467_v7  ;;  %v1094_v4 = vadd.f32 %v1058_v2, %v2469_v8  ;;  %v1332_v6 = vsel %vm1318_vm4, %v1303_v55, %v1304_v46  ;;  %v2763_v11 = vpop.f32.mrb[57].mxu0  ;;  %v2771_v63 = vpop.f32.mrb[57].mxu1 }
 0x15f   : > { %v2766_v59 = vsel %vm1574_vm5, %v1573_v15, %v1565_v54  ;;  %v1456_v18 = vrot.slane %v1455_v53, 1  ;;  %v1463_v20 = vsel %vm385_vm0, %v1402_v3, -inf  ;;  %v1333_v22 = vsel %vm1318_vm4, %v1302_v61, %v1303_v55  ;;  %v2773_v7 = vpop.f32.mrb[58].mxu0  ;;  %v2776_v12 = vpop.f32.mrb[58].mxu1 }
 0x160   : > { %v1464_v8 = vmax.f32 %v1462_v60, %v1463_v20  ;;  %v1405_v46 = vadd.f32 %v2551_v16, %v1369_v13  ;;  %v1367_v39 = vadd.f32 %v1333_v22, %v1093_v19  ;;  %v1368_v50 = vadd.f32 %v1332_v6, %v1094_v4  ;;  %v2778_v54 = vpop.f32.mrb[59].mxu0  ;;  %v2783_v56 = vpop.f32.mrb[59].mxu1 }
 0x161   : > { %v1457_v23 = vmax.f32 %v1455_v53, %v1456_v18  ;;  %v1034_v14 = vrot.slane %v2711_v10, 2  ;;  %v1308_v9 = vrot.slane %v2716_v47, 3  ;;  %v1032_v61 = vrot.slane %v2718_v40, 2 }
 0x162   : > { %v1465_v38 = vrot.slane %v1464_v8, 4  ;;  %v1474_v60 = vsel %vm385_vm0, %v1405_v46, -inf  ;;  %v1403_v2 = vadd.f32 %v2564_v24, %v1367_v39  ;;  %v1404_v49 = vadd.f32 %v2569_v42, %v1368_v50 }
 0x163   : > { %v1532_v55 = vadd.f32 %v2659_v52, %v1457_v23  ;;  %v1056_v15 = vsel %vm1044_vm3, %v1031_v0, %v1032_v61  ;;  %v1306_v10 = vrot.slane %v2723_v43, 3  ;;  %v1035_v47 = vrot.slane %v2725_v29, 2 }
 0x164   : > { %v1466_v53 = vmax.f32 %v1464_v8, %v1465_v38  ;;  %v1471_v40 = vsel %vm385_vm0, %v1403_v2, -inf  ;;  %v1472_v3 = vsel %vm385_vm0, %v1404_v49, -inf  ;;  %v1096_v13 = vadd.f32 %v1056_v15, %v2473_v27 }
 0x165   : > { %v1540_v19 = vpack.c.bf16 %v1532_v55, %v1532_v55  ;;  %v1473_v4 = vmax.f32 %v1471_v40, %v1472_v3  ;;  %v1330_v6 = vsel %vm1318_vm4, %v1305_v41, %v1306_v10  ;;  %v1053_v0 = vsel %vm1044_vm3, %v1034_v14, %v1035_v47  ;;  %v2802_v43 = vpop.f32.mrb[60].mxu0  ;;  %v2806_v8 = vpop.f32.mrb[60].mxu1 }
 0x166   : > { %v1467_v29 = vrot.slane %v1466_v53, 2  ;;  %v1370_v18 = vadd.f32 %v1330_v6, %v1096_v13  ;;  %v1099_v20 = vadd.f32 %v1053_v0, %v2477_v30  ;;  %v1309_v22 = vrot.slane %v2733_v37, 3  ;;  %v2808_v27 = vpop.f32.mrb[61].mxu0  ;;  %v2812_v50 = vpop.f32.mrb[61].mxu1 }
 0x167   : > { %v1567_v46 = vunpack.c.l.b16 %v1540_v19  ;;  %v1475_v1 = vmax.f32 %v1473_v4, %v1474_v60  ;;  %v1033_v39 = vrot.slane %v2735_v48, 2  ;;  %v1307_v41 = vrot.slane %v2739_v17, 3  ;;  %v2814_v23 = vpop.f32.mrb[62].mxu0  ;;  %v2820_v49 = vpop.f32.mrb[62].mxu1 }
 0x168   : > { %v1468_v38 = vmax.f32 %v1466_v53, %v1467_v29  ;;  %v1406_v2 = vadd.f32 %v2585_v31, %v1370_v18  ;;  %v1327_v30 = vsel %vm1318_vm4, %v1308_v9, %v1309_v22  ;;  %v1038_v37 = vrot.slane %v2755_v21, 2  ;;  %v2822_v55 = vpop.f32.mrb[63].mxu0  ;;  %v2828_v53 = vpop.f32.mrb[63].mxu1 }
 0x169   : > { %v1576_v60 = vrot.slane %v1567_v46, 6  ;;  %v1373_v48 = vadd.f32 %v1327_v30, %v1099_v20  ;;  %v1054_v17 = vsel %vm1044_vm3, %v1033_v39, %v1034_v14  ;;  %v1055_v15 = vsel %vm1044_vm3, %v1032_v61, %v1033_v39 }
 0x16a   : > { %v1469_v40 = vrot.slane %v1468_v38, 1  ;;  %v1476_v3 = vsel %vm385_vm0, %v1406_v2, -inf  ;;  %v1097_v13 = vadd.f32 %v1055_v15, %v2483_v33  ;;  %v1098_v21 = vadd.f32 %v1054_v17, %v2485_v34 }
 0x16b   : > { %v1578_v19 = vsel %vm1577_vm6, %v1576_v60, %v2766_v59  ;;  %v1477_v4 = vmax.f32 %v1475_v1, %v1476_v3  ;;  %v1409_v6 = vadd.f32 %v2551_v16, %v1373_v48  ;;  %v1328_v14 = vsel %vm1318_vm4, %v1307_v41, %v1308_v9 }
 0x16c   : > { %v1470_v61 = vmax.f32 %v1468_v38, %v1469_v40  ;;  %v1329_v0 = vsel %vm1318_vm4, %v1306_v10, %v1307_v41  ;;  %v1372_v29 = vadd.f32 %v1328_v14, %v1098_v21  ;;  %v1312_v18 = vrot.slane %v2761_v57, 3 }
 0x16d   : > { %v1478_v33 = vrot.slane %v1477_v4, 4  ;;  %v1487_v34 = vsel %vm385_vm0, %v1409_v6, -inf  ;;  %v1371_v20 = vadd.f32 %v1329_v0, %v1097_v13  ;;  %v1036_v59 = vrot.slane %v2763_v11, 2 }
 0x16e   : > { %v1533_v46 = vadd.f32 %v2659_v52, %v1470_v61  ;;  %v1408_v1 = vadd.f32 %v2569_v42, %v1372_v29  ;;  %v1310_v39 = vrot.slane %v2771_v63, 3  ;;  %v1039_v9 = vrot.slane %v2773_v7, 2 }
 0x16f   : > { %v1479_v38 = vmax.f32 %v1477_v4, %v1478_v33  ;;  %v1407_v10 = vadd.f32 %v2564_v24, %v1371_v20  ;;  %v1052_v57 = vsel %vm1044_vm3, %v1035_v47, %v1036_v59  ;;  %v1313_v41 = vrot.slane %v2776_v12, 3 }
 0x170   : > { %v1541_v2 = vpack.c.bf16 %v1533_v46, %v1533_v46  ;;  %v1485_v30 = vsel %vm385_vm0, %v1408_v1, -inf  ;;  %v1100_v11 = vadd.f32 %v1052_v57, %v2493_v58  ;;  %v1326_v60 = vsel %vm1318_vm4, %v1309_v22, %v1310_v39 }
 0x171   : > { %v1480_v48 = vrot.slane %v1479_v38, 2  ;;  %v1484_v63 = vsel %vm385_vm0, %v1407_v10, -inf  ;;  %v1049_v7 = vsel %vm1044_vm3, %v1038_v37, %v1039_v9  ;;  %v1323_v17 = vsel %vm1318_vm4, %v1312_v18, %v1313_v41 }
 0x172   : > { %v1568_v47 = vunpack.c.l.b16 %v1541_v2  ;;  %v1486_v15 = vmax.f32 %v1484_v63, %v1485_v30  ;;  %v1374_v12 = vadd.f32 %v1326_v60, %v1100_v11  ;;  %v1103_v40 = vadd.f32 %v1049_v7, %v2497_v62 }
 0x173   : > { %v1481_v3 = vmax.f32 %v1479_v38, %v1480_v48  ;;  %v1037_v58 = vrot.slane %v2778_v54, 2  ;;  %v1311_v13 = vrot.slane %v2783_v56, 3  ;;  %v1042_v22 = vrot.slane %v2802_v43, 2 }
 0x174   : > { %v1579_v21 = vrot.slane %v1568_v47, 5  ;;  %v1410_v4 = vadd.f32 %v2585_v31, %v1374_v12  ;;  %v1488_v6 = vmax.f32 %v1486_v15, %v1487_v34  ;;  %v1377_v14 = vadd.f32 %v1323_v17, %v1103_v40 }
 0x175   : > { %v1482_v61 = vrot.slane %v1481_v3, 1  ;;  %v1050_v0 = vsel %vm1044_vm3, %v1037_v58, %v1038_v37  ;;  %v1051_v29 = vsel %vm1044_vm3, %v1036_v59, %v1037_v58  ;;  %v1324_v62 = vsel %vm1318_vm4, %v1311_v13, %v1312_v18 }
 0x176   : > { %v1581_v54 = vsel %vm1580_vm7, %v1579_v21, %v1578_v19  ;;  %v1489_v56 = vsel %vm385_vm0, %v1410_v4, -inf  ;;  %v1413_v43 = vadd.f32 %v2551_v16, %v1377_v14  ;;  %v1101_v33 = vadd.f32 %v1051_v29, %v2503_v51 }
 0x177   : > { %v1483_v34 = vmax.f32 %v1481_v3, %v1482_v61  ;;  %v1490_v20 = vmax.f32 %v1488_v6, %v1489_v56  ;;  %v1102_v46 = vadd.f32 %v1050_v0, %v2505_v5  ;;  %v1325_v37 = vsel %vm1318_vm4, %v1310_v39, %v1311_v13 }
 0x178   : > { %v1500_v59 = vsel %vm385_vm0, %v1413_v43, -inf  ;;  %v1375_v1 = vadd.f32 %v1325_v37, %v1101_v33  ;;  %v1316_v18 = vrot.slane %v2806_v8, 3  ;;  %v1040_v19 = vrot.slane %v2808_v27, 2 }
 0x179   : > { %v1534_v38 = vadd.f32 %v2659_v52, %v1483_v34  ;;  %v1491_v10 = vrot.slane %v1490_v20, 4  ;;  %v1376_v57 = vadd.f32 %v1324_v62, %v1102_v46  ;;  %v1314_v51 = vrot.slane %v2812_v50, 3 }
 0x17a   : > { %v1411_v2 = vadd.f32 %v2564_v24, %v1375_v1  ;;  %v1048_v5 = vsel %vm1044_vm3, %v1039_v9, %v1040_v19  ;;  %v1043_v39 = vrot.slane %v2814_v23, 2  ;;  %v1317_v30 = vrot.slane %v2820_v49, 3 }
 0x17b   : > { %v1542_v11 = vpack.c.bf16 %v1534_v38, %v1534_v38  ;;  %v1492_v60 = vmax.f32 %v1490_v20, %v1491_v10  ;;  %v1412_v8 = vadd.f32 %v2569_v42, %v1376_v57  ;;  %v1104_v27 = vadd.f32 %v1048_v5, %v2509_v26 }
 0x17c   : > { %v1497_v48 = vsel %vm385_vm0, %v1411_v2, -inf  ;;  %v1322_v50 = vsel %vm1318_vm4, %v1313_v41, %v1314_v51  ;;  %v1045_v63 = vsel %vm1044_vm3, %v1042_v22, %v1043_v39  ;;  %v2996_v9 = vrot.slane %v2529_v28, 2 }
 0x17d   : > { %v1569_v49 = vunpack.c.l.b16 %v1542_v11  ;;  %v1493_v7 = vrot.slane %v1492_v60, 2  ;;  %v1498_v17 = vsel %vm385_vm0, %v1412_v8, -inf  ;;  %v1378_v47 = vadd.f32 %v1322_v50, %v1104_v27 }
 0x17e   : > { %v1076_v23 = vsel %vm1044_vm3, %v1043_v39, %v2996_v9  ;;  %v1499_v15 = vmax.f32 %v1497_v48, %v1498_v17  ;;  %v1107_v26 = vadd.f32 %v1045_v63, %v2517_v32  ;;  %v1319_v41 = vsel %vm1318_vm4, %v1316_v18, %v1317_v30 }
 0x17f   : > { %v1108_v12 = vadd.f32 %v1076_v23, %v2519_v36  ;;  %v1582_v40 = vrot.slane %v1569_v49, 4  ;;  %v1494_v3 = vmax.f32 %v1492_v60, %v1493_v7  ;;  %v1414_v28 = vadd.f32 %v2585_v31, %v1378_v47 }
 0x180   : > { %v2997_v58 = vrot.slane %v2531_v35, 3  ;;  %v1501_v21 = vmax.f32 %v1499_v15, %v1500_v59  ;;  %v1381_v4 = vadd.f32 %v1319_v41, %v1107_v26  ;;  %v1041_v14 = vrot.slane %v2822_v55, 2  ;;  %v1820_v41 = vld [vmem:[%s2990_s5] ss:$0 sm:$0xff] }
 0x181   : > { %v1495_v32 = vrot.slane %v1494_v3, 1  ;;  %v1502_v36 = vsel %vm385_vm0, %v1414_v28, -inf  ;;  %v1315_v61 = vrot.slane %v2828_v53, 3  ;;  %v1584_v0 = vsel %vm1583_vm8, %v1582_v40, %v1581_v54 }
 0x182   : > { %v1350_v13 = vsel %vm1318_vm4, %v1317_v30, %v2997_v58  ;;  %v1503_v29 = vmax.f32 %v1501_v21, %v1502_v36  ;;  %v1046_v62 = vsel %vm1044_vm3, %v1041_v14, %v1042_v22  ;;  %v1047_v56 = vsel %vm1044_vm3, %v1040_v19, %v1041_v14 }
 0x183   : > { %v1382_v6 = vadd.f32 %v1350_v13, %v1108_v12  ;;  %v1496_v35 = vmax.f32 %v1494_v3, %v1495_v32  ;;  %v1106_v43 = vadd.f32 %v1046_v62, %v2527_v45  ;;  %v1320_v55 = vsel %vm1318_vm4, %v1315_v61, %v1316_v18 }
 0x184   : > { %v1504_v33 = vrot.slane %v1503_v29, 4  ;;  %v1105_v34 = vadd.f32 %v1047_v56, %v2525_v44  ;;  %v1321_v54 = vsel %vm1318_vm4, %v1314_v51, %v1315_v61  ;;  %v1417_v45 = vadd.f32 %v2551_v16, %v1381_v4 }
 0x185   : > { %v1535_v53 = vadd.f32 %v2659_v52, %v1496_v35  ;;  %v1380_v20 = vadd.f32 %v1320_v55, %v1106_v43  ;;  %v1418_v10 = vadd.f32 %v2585_v31, %v1382_v6 }
 0x186   : > { %v1505_v46 = vmax.f32 %v1503_v29, %v1504_v33  ;;  %v1379_v22 = vadd.f32 %v1321_v54, %v1105_v34  ;;  %v1513_v5 = vsel %vm385_vm0, %v1417_v45, -inf }
 0x187   : > { %v1543_v37 = vpack.c.bf16 %v1535_v53, %v1535_v53  ;;  %v1416_v59 = vadd.f32 %v2569_v42, %v1380_v20  ;;  %v1515_v16 = vsel %vm385_vm0, %v1418_v10, -inf }
 0x188   : > { %v1506_v1 = vrot.slane %v1505_v46, 2  ;;  %v1415_v19 = vadd.f32 %v2564_v24, %v1379_v22 }
 0x189   : > { %v1570_v18 = vunpack.c.l.b16 %v1543_v37  ;;  %v1511_v38 = vsel %vm385_vm0, %v1416_v59, -inf }
 0x18a   : > { %v1507_v44 = vmax.f32 %v1505_v46, %v1506_v1  ;;  %v1510_v25 = vsel %vm385_vm0, %v1415_v19, -inf }
 0x18b   : > { %v1585_v57 = vrot.slane %v1570_v18, 3  ;;  %v1512_v51 = vmax.f32 %v1510_v25, %v1511_v38 }
 0x18c   : > { %v1508_v2 = vrot.slane %v1507_v44, 1 }
 0x18d   : > { %v1514_v42 = vmax.f32 %v1512_v51, %v1513_v5  ;;  %v1587_v39 = vsel %vm1586_vm9, %v1585_v57, %v1584_v0 }
 0x18e   : > { %v1509_v30 = vmax.f32 %v1507_v44, %v1508_v2 }
 0x18f   : > { %v1516_v24 = vmax.f32 %v1514_v42, %v1515_v16 }
 0x190   : > { %v1536_v11 = vadd.f32 %v2659_v52, %v1509_v30 }
 0x191   : > { %v1517_v60 = vrot.slane %v1516_v24, 4 }
 0x192   : > { %v1544_v8 = vpack.c.bf16 %v1536_v11, %v1536_v11 }
 0x193   : > { %v1518_v27 = vmax.f32 %v1516_v24, %v1517_v60 }
 0x194   : > { %v1571_v31 = vunpack.c.l.b16 %v1544_v8 }
 0x195   : > { %v1519_v48 = vrot.slane %v1518_v27, 2 }
 0x196   : > { %v1588_v50 = vrot.slane %v1571_v31, 2 }
 0x197   : > { %v1520_v63 = vmax.f32 %v1518_v27, %v1519_v48 }
 0x198   : > { %v1590_v9 = vsel %vm1589_vm10, %v1588_v50, %v1587_v39 }
 0x199   : > { %v1521_v23 = vrot.slane %v1520_v63, 1 }
 0x19b   : > { %v1522_v49 = vmax.f32 %v1520_v63, %v1521_v23 }
 0x19d   : > { %v1537_v7 = vadd.f32 %v2659_v52, %v1522_v49 }
 0x19f   : > { %v1545_v17 = vpack.c.bf16 %v1537_v7, %v1537_v7 }
 0x1a1   : > { %v1572_v47 = vunpack.c.l.b16 %v1545_v17 }
 0x1a3   : > { %v1591_v15 = vrot.slane %v1572_v47, 1 }
 0x1a5   : > { %v1593_v26 = vsel %vm1592_vm11, %v1591_v15, %v1590_v9 }
 0x1a6   : > { %v1594_v12 = vpack.c.b16 %v1593_v26, %v1593_v26 }
 0x1a8   : > { %2052 = vmatmul.mubr.msk.bf16.vlgmr.msra.gmra.mrb[64].mxu0 %vm385_vm0, %v1594_v12 }
 0x27b   : > { %v1644_v40 = vpop.f32.mrb[64].mxu0 }
 0x27c   : > { %v1645_v52 = vadd.f32 %v1820_v41, %v1644_v40  ;;  %v2053_v3 = vpop.f32.mrb[65].mxu0 }
 0x27d   : > { %v1647_v28 = vpop.f32.mrb[66].mxu0 }
 0x27e   : > { %1650 = vst [vmem:[%s245_s19] sm:$0xff] %v1645_v52  ;;  %v2054_v58 = vpop.f32.mrb[67].mxu0 }
 0x27f   : > { %2135 = shalt.err (!%p2132_p3)
}
 0x280   : > { %s2136_s11 = scalar_lea.hbm %s2943_s29, 128  ;;  %s2140_s16 = scalar_lea.hbm %s2991_s6, 256 }
 0x281   : > { %p2137_p4 = scmp.ne.s32.totalorder %s2943_s29, %s2136_s11  ;;  %p2141_p9 = scmp.lt.u32.totalorder %s2943_s29, %s2991_s6 }
 0x282   : > { %p2142_p10 = scmp.lt.u32.totalorder %s2140_s16, %s2136_s11  ;;  %p2144_p12 = scmp.lt.u32.totalorder %s2136_s11, %s2943_s29 }
 0x283   : > { %p2138_p7 = pnand %p2137_p4, %p2262_p5 }
 0x284   : > { %p2143_p11 = por %p2142_p10, %p2141_p9 }
 0x285   : > { %p2139_p8 = pneg %p2138_p7 }
 0x286   : > { %p2145_p13 = por %p2144_p12, %p2143_p11 }
 0x288   : > { %p2146_p0 = pnand %p2145_p13, %p2139_p8 }
 0x28a   : > { %2149 = shalt.err (!%p2146_p0)
}
 0x28b   : > { %2055 = dma.vmem_to_hbm [thread:$0]  (%p2262_p5), %s2945_s20, 128, %s2943_s29, %s1652_s9  }
 0x28c PF: > { %p2061_p1 = scmp.ge.s32.totalorder %s2184_s24, 2  ;;  %s1677_s19 = sand.u32 1, %s2172_s21  }
 0x28d   : > { %s1678_s26 = scalar_lea.sflag [#allocation3], %s1677_s19 }
 0x28e   : > { %p2058_p2 = pnand %p2061_p1, %p2266_p6 }
 0x290   : > { %2167 = dma.done.wait (!%p2058_p2), %s1678_s26, 128  }
 0x291   : > { %2169 = vsyncadd (!%p2058_p2), %s1678_s26, 4294967168  ;;  %p16_p3 = scmp.ge.s32.totalorder %s2249_s27, 4   ;;  %s2998_s21 = smov %s2176_s22 }
 0x292   : > { %s2999_s22 = smov %s2180_s23  ;;  %s3000_s23 = smov %s2260_s30 }
 0x293   : > { %s3001_s24 = smov %s2249_s27  ;;  %18 = sbr.rel (!%p16_p3) target bundleno = 3 (0x3), region = 79 }
 0x29a   :  { %1683 = vsyncpa [#allocation3], 1 }
 0x29b   :  { %1685 = vsyncpa [#allocation3 + $0x1], 1 }

</bundles_post_ra>
